<compile_context>
chip_gen: v5e
topology: v5e:2x2
jax: 0.10.0
libtpu: 0.0.40
codegen_flags: <defaults>
</compile_context>

<pallas_src>
import jax
import jax.numpy as jnp
from jax import lax
from jax.experimental import pallas as pl
from jax.experimental.pallas import tpu as pltpu


def _nearest_embed_kernel(x_ref, w_ref, w2_ref, res_ref, idx_ref,
                          cnt_ref, esum_ref):
    xt = x_ref[...]                                   # (C, TN) f32
    w = w_ref[...]                                    # (C, K)  f32
    w2 = w2_ref[...]                                  # (K, 1)  f32 (hoisted ||w_k||^2)
    K = w.shape[1]
    TN = xt.shape[1]

    # squared L2 distance up to the per-point constant ||x_n||^2:
    #   d2[k, n] = ||w_k||^2 - 2 w_k . x_n       (argmin over k is unchanged)
    scores = lax.dot_general(w, xt, (((0,), (0,)), ((), ())),
                             preferred_element_type=jnp.float32)      # (K, TN)
    d2 = w2 - 2.0 * scores                                            # (K, TN)

    dmin = jnp.min(d2, axis=0, keepdims=True)                         # (1, TN)
    iota = lax.broadcasted_iota(jnp.int32, d2.shape, 0)               # (K, TN)
    # first-occurrence argmin over the codebook (sublane) axis
    cand = jnp.where(d2 <= dmin, iota, K)
    idx = jnp.min(cand, axis=0, keepdims=True)                        # (1, TN) i32

    onehot = (iota == idx).astype(jnp.float32)                        # (K, TN)

    # gather selected codes: w @ onehot -> (C, TN), already in output layout
    res = lax.dot_general(w, onehot, (((1,), (0,)), ((), ())),
                          preferred_element_type=jnp.float32)
    res_ref[...] = res.astype(res_ref.dtype)
    idx_ref[...] = idx

    # per-tile EMA statistics (reduced across tiles in the wrapper so the grid
    # axes stay "parallel").  Counts via a ones-row MXU dot -> lane-dense (1, K)
    # store (avoids the cross-lane XLU reduce and the narrow (K, 1) writeback).
    ones_row = jnp.ones((1, TN), jnp.float32)
    cnt_ref[...] = lax.dot_general(ones_row, onehot, (((1,), (1,)), ((), ())),
                                   preferred_element_type=jnp.float32)  # (1, K)
    # flatten @ emb_onehot  ==  xt @ onehot.T  -> (C, K)
    esum_ref[...] = lax.dot_general(xt, onehot, (((1,), (1,)), ((), ())),
                                    preferred_element_type=jnp.float32)


def _choose_tile(hw, target):
    """Largest divisor of hw that is <= target, preferring multiples of 128."""
    if hw <= target:
        return hw
    best = 1
    for t in range(target, 0, -1):
        if hw % t == 0:
            if t % 128 == 0:
                return t
            best = max(best, t)
    return best


def nearest_embed_ema(x, weight, cluster_size, embed_avg,
                      decay=0.99, eps=1e-5, training=True, tile_hw=512):
    """Functional NearestEmbedEMA forward.

    Returns ((result, argmin), (new_weight, new_cluster_size, new_embed_avg)).
    Buffer updates are returned functionally instead of mutated in place.
    """
    B, C, H, W = x.shape
    K = weight.shape[1]
    HW = H * W

    t = _choose_tile(HW, tile_hw)
    T = HW // t

    xr = x.reshape(B, C, HW).astype(jnp.float32)      # pure reshape, no transpose
    w = weight.astype(jnp.float32)
    w2 = jnp.sum(w * w, axis=0)[:, None]              # (K, 1), computed once

    out_shapes = (
        jax.ShapeDtypeStruct((B, C, HW), jnp.float32),     # quantized codes
        jax.ShapeDtypeStruct((B, 1, HW), jnp.int32),       # argmin (lane-dense)
        jax.ShapeDtypeStruct((B, T, 1, K), jnp.float32),   # per-tile one-hot counts
        jax.ShapeDtypeStruct((B, T, C, K), jnp.float32),   # per-tile flatten @ onehot
    )

    # NOTE: if K (n_emb) or tile_hw is scaled up, the (K, tile) f32 distance
    # intermediate grows as K*tile*4 bytes; keep it well under the per-chip
    # scoped VMEM limit (or raise vmem_limit_bytes) before increasing tile_hw.
    res, idx, cnt_p, esum_p = pl.pallas_call(
        _nearest_embed_kernel,
        out_shape=out_shapes,
        grid_spec=pltpu.PrefetchScalarGridSpec(
            num_scalar_prefetch=0,
            grid=(B, T),
            in_specs=[
                pl.BlockSpec((None, C, t), lambda b, j: (b, 0, j)),
                pl.BlockSpec((C, K), lambda b, j: (0, 0)),
                pl.BlockSpec((K, 1), lambda b, j: (0, 0)),
            ],
            out_specs=[
                pl.BlockSpec((None, C, t), lambda b, j: (b, 0, j)),
                pl.BlockSpec((None, 1, t), lambda b, j: (b, 0, j)),
                pl.BlockSpec((None, None, 1, K), lambda b, j: (b, j, 0, 0)),
                pl.BlockSpec((None, None, C, K), lambda b, j: (b, j, 0, 0)),
            ],
        ),
        compiler_params=pltpu.CompilerParams(
            dimension_semantics=("parallel", "parallel")),
    )(xr, w, w2)

    result = res.reshape(B, C, H, W)                  # (B, C, H, W), no transpose
    argmin = idx.reshape(B, H, W)                     # (B, H, W) int32

    if training:
        n_idx_choice = jnp.sum(cnt_p, axis=(0, 1))[0]                 # (K,)
        embed_sum = jnp.sum(esum_p, axis=(0, 1))                      # (C, K)
        n_idx_choice = jnp.where(n_idx_choice == 0, 1.0, n_idx_choice)
        new_cluster_size = cluster_size * decay + (1.0 - decay) * n_idx_choice
        new_embed_avg = embed_avg * decay + (1.0 - decay) * embed_sum
        n = new_cluster_size.sum()
        cs = (new_cluster_size + eps) / (n + K * eps) * n
        new_weight = new_embed_avg / cs[None, :]
    else:
        new_weight, new_cluster_size, new_embed_avg = weight, cluster_size, embed_avg

    return (result, argmin), (new_weight, new_cluster_size, new_embed_avg)


if __name__ == "__main__":
    key = jax.random.PRNGKey(0)
    k_w, k_x = jax.random.split(key)

    n_emb, emb_dim = 128, 8
    B, H, W = 2, 16, 16

    # __init__: embed = torch.rand(emb_dim, n_emb); embed_avg = embed.clone()
    weight = jax.random.uniform(k_w, (emb_dim, n_emb), dtype=jnp.float32)
    cluster_size = jnp.zeros((n_emb,), jnp.float32)
    embed_avg = weight

    x = jax.random.normal(k_x, (B, emb_dim, H, W), dtype=jnp.float32)

    (result, argmin), (w_new, cs_new, ea_new) = nearest_embed_ema(
        x, weight, cluster_size, embed_avg, training=True)
    jax.block_until_ready((result, argmin, w_new, cs_new, ea_new))

    assert result.shape == (B, emb_dim, H, W) and result.dtype == jnp.float32
    assert argmin.shape == (B, H, W) and argmin.dtype == jnp.int32
    assert w_new.shape == (emb_dim, n_emb)
    assert cs_new.shape == (n_emb,)
    assert ea_new.shape == (emb_dim, n_emb)

    # self-consistency: quantized vectors must equal the selected codebook cols
    sel = jnp.take(weight, argmin.reshape(-1), axis=1)                 # (C, N)
    got = result.reshape(B, emb_dim, H * W).transpose(1, 0, 2).reshape(emb_dim, -1)
    assert jnp.allclose(got, sel, atol=1e-4)

    # self-consistency: per-code counts from the kernel match a pure-JAX count
    onehot_ref = (argmin.reshape(-1)[:, None]
                  == jnp.arange(n_emb)[None, :]).astype(jnp.float32)
    cnt_ref = onehot_ref.sum(0)
    cnt_ref = jnp.where(cnt_ref == 0, 1.0, cnt_ref)
    cs_expect = cluster_size * 0.99 + 0.01 * cnt_ref
    assert jnp.allclose(cs_new, cs_expect, atol=1e-4)

    print("KERNEL_OK")
</pallas_src>

<mosaic_0001>
module attributes {stable_mosaic.version = 11 : i64} {
  func.func @_nearest_embed_kernel(%arg0: i32, %arg1: i32, %arg2: memref<1x8x256xf32, #tpu.memory_space<vmem>>, %arg3: memref<8x128xf32, #tpu.memory_space<vmem>>, %arg4: memref<128x1xf32, #tpu.memory_space<vmem>>, %arg5: memref<1x8x256xf32, #tpu.memory_space<vmem>>, %arg6: memref<1x1x256xi32, #tpu.memory_space<vmem>>, %arg7: memref<1x1x1x128xf32, #tpu.memory_space<vmem>>, %arg8: memref<1x1x8x128xf32, #tpu.memory_space<vmem>>) attributes {dimension_semantics = [#tpu.dimension_semantics<parallel>, #tpu.dimension_semantics<parallel>], iteration_bounds = array<i64: 2, 1>, scalar_prefetch = 0 : i64, scratch_operands = 0 : i64, tpu.core_type = #tpu.core_type<tc>, window_params = [{transform_indices = @transform_0, window_bounds = array<i64: 1, 8, 256>}, {pipeline_mode = #tpu.pipeline_mode<synchronous>, transform_indices = @transform_1, window_bounds = array<i64: 8, 128>}, {pipeline_mode = #tpu.pipeline_mode<synchronous>, transform_indices = @transform_2, window_bounds = array<i64: 128, 1>}, {transform_indices = @transform_3, window_bounds = array<i64: 1, 8, 256>}, {transform_indices = @transform_4, window_bounds = array<i64: 1, 1, 256>}, {transform_indices = @transform_5, window_bounds = array<i64: 1, 1, 1, 128>}, {transform_indices = @transform_6, window_bounds = array<i64: 1, 1, 8, 128>}]} {
    %c0 = arith.constant 0 : index
    %c0_0 = arith.constant 0 : index
    %c0_1 = arith.constant 0 : index
    %0 = vector.load %arg2[%c0, %c0_0, %c0_1] : memref<1x8x256xf32, #tpu.memory_space<vmem>>, vector<1x8x256xf32>
    %1 = vector.shape_cast %0 : vector<1x8x256xf32> to vector<8x256xf32>
    %c0_2 = arith.constant 0 : index
    %c0_3 = arith.constant 0 : index
    %2 = vector.load %arg3[%c0_2, %c0_3] : memref<8x128xf32, #tpu.memory_space<vmem>>, vector<8x128xf32>
    %c0_4 = arith.constant 0 : index
    %c0_5 = arith.constant 0 : index
    %3 = vector.load %arg4[%c0_4, %c0_5] : memref<128x1xf32, #tpu.memory_space<vmem>>, vector<128x1xf32>
    %cst = arith.constant dense<0.000000e+00> : vector<128x256xf32>
    %4 = tpu.matmul %2, %1, %cst {dimension_numbers = #tpu.dot_dimension_numbers<[0], [0], [1], [1], [0, 1, 1, 1], [], []>} : vector<8x128xf32>, vector<8x256xf32>, vector<128x256xf32> -> vector<128x256xf32>
    %cst_6 = arith.constant 2.000000e+00 : f32
    %5 = vector.broadcast %cst_6 : f32 to vector<128x256xf32>
    %6 = arith.mulf %5, %4 : vector<128x256xf32>
    %7 = vector.broadcast %3 : vector<128x1xf32> to vector<128x256xf32>
    %8 = arith.subf %7, %6 : vector<128x256xf32>
    %cst_7 = arith.constant dense<0x7F800000> : vector<256xf32>
    %9 = vector.multi_reduction <minimumf>, %8, %cst_7 [0] : vector<128x256xf32> to vector<256xf32>
    %10 = vector.shape_cast %9 : vector<256xf32> to vector<1x256xf32>
    %11 = tpu.iota {dimensions = array<i32: 0>} : vector<128x256xi32>
    %12 = vector.broadcast %10 : vector<1x256xf32> to vector<128x256xf32>
    %13 = arith.cmpf ole, %8, %12 : vector<128x256xf32>
    %c128_i32 = arith.constant 128 : i32
    %14 = vector.broadcast %c128_i32 : i32 to vector<128x256xi32>
    %15 = arith.select %13, %11, %14 : vector<128x256xi1>, vector<128x256xi32>
    %cst_8 = arith.constant dense<2147483647> : vector<256xi32>
    %16 = vector.multi_reduction <minsi>, %15, %cst_8 [0] : vector<128x256xi32> to vector<256xi32>
    %17 = vector.shape_cast %16 : vector<256xi32> to vector<1x256xi32>
    %18 = vector.broadcast %17 : vector<1x256xi32> to vector<128x256xi32>
    %19 = arith.cmpi eq, %11, %18 : vector<128x256xi32>
    %20 = arith.extui %19 : vector<128x256xi1> to vector<128x256xi32>
    %21 = arith.sitofp %20 : vector<128x256xi32> to vector<128x256xf32>
    %cst_9 = arith.constant dense<0.000000e+00> : vector<8x256xf32>
    %22 = tpu.matmul %2, %21, %cst_9 {dimension_numbers = #tpu.dot_dimension_numbers<[1], [0], [0], [1], [0, 0, 1, 1], [], []>} : vector<8x128xf32>, vector<128x256xf32>, vector<8x256xf32> -> vector<8x256xf32>
    %c0_10 = arith.constant 0 : index
    %c0_11 = arith.constant 0 : index
    %c0_12 = arith.constant 0 : index
    %23 = vector.load %arg5[%c0_10, %c0_11, %c0_12] : memref<1x8x256xf32, #tpu.memory_space<vmem>>, vector<1x8x256xf32>
    %24 = vector.shape_cast %23 : vector<1x8x256xf32> to vector<8x256xf32>
    %25 = vector.shape_cast %22 : vector<8x256xf32> to vector<1x8x256xf32>
    tpu.vector_store %arg5[%c0_10, %c0_11, %c0_12], %25 {strides = array<i32>} : memref<1x8x256xf32, #tpu.memory_space<vmem>>, vector<1x8x256xf32>,
    %c0_13 = arith.constant 0 : index
    %c0_14 = arith.constant 0 : index
    %c0_15 = arith.constant 0 : index
    %26 = vector.load %arg6[%c0_13, %c0_14, %c0_15] : memref<1x1x256xi32, #tpu.memory_space<vmem>>, vector<1x1x256xi32>
    %27 = vector.shape_cast %26 : vector<1x1x256xi32> to vector<1x256xi32>
    %28 = vector.shape_cast %17 : vector<1x256xi32> to vector<1x1x256xi32>
    tpu.vector_store %arg6[%c0_13, %c0_14, %c0_15], %28 {strides = array<i32>} : memref<1x1x256xi32, #tpu.memory_space<vmem>>, vector<1x1x256xi32>,
    %cst_16 = arith.constant 1.000000e+00 : f32
    %29 = vector.broadcast %cst_16 : f32 to vector<1x256xf32>
    %cst_17 = arith.constant dense<0.000000e+00> : vector<1x128xf32>
    %30 = tpu.matmul %29, %21, %cst_17 {dimension_numbers = #tpu.dot_dimension_numbers<[1], [1], [0], [0], [0, 0, 1, 0], [], []>} : vector<1x256xf32>, vector<128x256xf32>, vector<1x128xf32> -> vector<1x128xf32>
    %c0_18 = arith.constant 0 : index
    %c0_19 = arith.constant 0 : index
    %c0_20 = arith.constant 0 : index
    %c0_21 = arith.constant 0 : index
    %31 = vector.load %arg7[%c0_18, %c0_19, %c0_20, %c0_21] : memref<1x1x1x128xf32, #tpu.memory_space<vmem>>, vector<1x1x1x128xf32>
    %32 = vector.shape_cast %31 : vector<1x1x1x128xf32> to vector<1x128xf32>
    %33 = vector.shape_cast %30 : vector<1x128xf32> to vector<1x1x1x128xf32>
    tpu.vector_store %arg7[%c0_18, %c0_19, %c0_20, %c0_21], %33 {strides = array<i32>} : memref<1x1x1x128xf32, #tpu.memory_space<vmem>>, vector<1x1x1x128xf32>,
    %cst_22 = arith.constant dense<0.000000e+00> : vector<8x128xf32>
    %34 = tpu.matmul %1, %21, %cst_22 {dimension_numbers = #tpu.dot_dimension_numbers<[1], [1], [0], [0], [0, 0, 1, 0], [], []>} : vector<8x256xf32>, vector<128x256xf32>, vector<8x128xf32> -> vector<8x128xf32>
    %c0_23 = arith.constant 0 : index
    %c0_24 = arith.constant 0 : index
    %c0_25 = arith.constant 0 : index
    %c0_26 = arith.constant 0 : index
    %35 = vector.load %arg8[%c0_23, %c0_24, %c0_25, %c0_26] : memref<1x1x8x128xf32, #tpu.memory_space<vmem>>, vector<1x1x8x128xf32>
    %36 = vector.shape_cast %35 : vector<1x1x8x128xf32> to vector<8x128xf32>
    %37 = vector.shape_cast %34 : vector<8x128xf32> to vector<1x1x8x128xf32>
    tpu.vector_store %arg8[%c0_23, %c0_24, %c0_25, %c0_26], %37 {strides = array<i32>} : memref<1x1x8x128xf32, #tpu.memory_space<vmem>>, vector<1x1x8x128xf32>,
    return
  }
  func.func @transform_0(%arg0: i32, %arg1: i32) -> (i32, i32, i32) {
    %c0_i32 = arith.constant 0 : i32
    %c0_i32_0 = arith.constant 0 : i32
    return %arg0, %c0_i32, %arg1 : i32, i32, i32
  }
  func.func @transform_1(%arg0: i32, %arg1: i32) -> (i32, i32) {
    %c0_i32 = arith.constant 0 : i32
    %c0_i32_0 = arith.constant 0 : i32
    %c0_i32_1 = arith.constant 0 : i32
    return %c0_i32, %c0_i32_0 : i32, i32
  }
  func.func @transform_2(%arg0: i32, %arg1: i32) -> (i32, i32) {
    %c0_i32 = arith.constant 0 : i32
    %c0_i32_0 = arith.constant 0 : i32
    %c0_i32_1 = arith.constant 0 : i32
    return %c0_i32, %c0_i32_0 : i32, i32
  }
  func.func @transform_3(%arg0: i32, %arg1: i32) -> (i32, i32, i32) {
    %c0_i32 = arith.constant 0 : i32
    %c0_i32_0 = arith.constant 0 : i32
    return %arg0, %c0_i32, %arg1 : i32, i32, i32
  }
  func.func @transform_4(%arg0: i32, %arg1: i32) -> (i32, i32, i32) {
    %c0_i32 = arith.constant 0 : i32
    %c0_i32_0 = arith.constant 0 : i32
    return %arg0, %c0_i32, %arg1 : i32, i32, i32
  }
  func.func @transform_5(%arg0: i32, %arg1: i32) -> (i32, i32, i32, i32) {
    %c0_i32 = arith.constant 0 : i32
    %c0_i32_0 = arith.constant 0 : i32
    %c0_i32_1 = arith.constant 0 : i32
    return %arg0, %arg1, %c0_i32, %c0_i32_0 : i32, i32, i32, i32
  }
  func.func @transform_6(%arg0: i32, %arg1: i32) -> (i32, i32, i32, i32) {
    %c0_i32 = arith.constant 0 : i32
    %c0_i32_0 = arith.constant 0 : i32
    %c0_i32_1 = arith.constant 0 : i32
    return %arg0, %arg1, %c0_i32, %c0_i32_0 : i32, i32, i32, i32
  }
}

</mosaic_0001>

<bundles_post_ra>
// kernel: tpu_custom_call.1
= control target key start
LH: loop header
LB: loop body
LE: loop exit
PB: predicated region body
PF: predicated region fallthrough
CT: control target
= control target key end

     0   :  { %s2892_s0 = inlined_call_operand.vmem [shape: f32[2,8,256], index: 0, kind: input, shape index: {}]   ;;  %s2893_s1 = inlined_call_operand.vmem [shape: f32[8,128], index: 1, kind: input, shape index: {}]   ;;  %s2894_s2 = inlined_call_operand.vmem [shape: f32[128,1], index: 2, kind: input, shape index: {}]   ;;  %s2895_s3 = inlined_call_operand.hbm [shape: f32[2,8,256], index: 3, kind: output, shape index: {0}]   ;;  %s2896_s4 = inlined_call_operand.hbm [shape: s32[2,1,256], index: 4, kind: output, shape index: {1}]   ;;  %s2897_s5 = inlined_call_operand.hbm [shape: f32[2,1,1,128], index: 5, kind: output, shape index: {2}]   ;;  %s2898_s6 = inlined_call_operand.hbm [shape: f32[2,1,8,128], index: 6, kind: output, shape index: {3}]  }
   0x1   :  { %2915 = sst [smem:[#allocation12_spill]] %s2892_s0 }
   0x2   :  { %2916 = sst [smem:[#allocation13_spill]] %s2893_s1 }
   0x3   :  { %2917 = sst [smem:[#allocation14_spill]] %s2894_s2 }
   0x4   :  { %12 = vsyncpa [#allocation3], 0 }
   0x5   :  { %14 = vsyncpa [#allocation3 + $0x1], 0 }
   0x6   :  { %15 = vsyncpa [#allocation5], 0 }
   0x7   :  { %17 = vsyncpa [#allocation5 + $0x1], 0 }
   0x8   :  { %18 = vsyncpa [#allocation8], 0 }
   0x9   :  { %20 = vsyncpa [#allocation8 + $0x1], 0  ;;  %s1835_s21 = smov 0   ;;  %s1837_s22 = smov 0  }
   0xa   :  { %s1839_s23 = smov 0   ;;  %s1841_s24 = smov 0  }
   0xb   :  { %s1843_s25 = smov 0   ;;  %s1845_s26 = smov 0  }
   0xc LB: > { %s1367_s27 = sadd.s32 4294967295, %s1796_s26   ;;  %s2914_s28 = sadd.s32 4294967294, %s1796_s26   ;;  %s1796_s26 = sphi %s1845_s26, %s26_s26   ;;  %s1792_s25 = sphi %s1843_s25, %s2955_s25   ;;  %s1788_s24 = sphi %s1841_s24, %s2954_s24   ;;  %s1784_s23 = sphi %s1839_s23, %s2953_s23   ;;  %s1780_s22 = sphi %s1837_s22, %s2952_s22   ;;  %s1776_s21 = sphi %s1835_s21, %s2951_s21  }
   0xd   : > { %s38_s29 = sadd.s32 1, %s1792_s25  ;;  %s117_s30 = sadd.s32 1, %s1784_s23 }
   0xe   : > { %p40_p0 = scmp.ge.s32.totalorder %s38_s29, 2  ;;  %p127_p1 = scmp.ne.s32.totalorder %s1784_s23, %s1780_s22 }
   0xf   : > { %p128_p2 = scmp.eq.s32.totalorder %s1367_s27, 1  ;;  %p133_p3 = scmp.ne.s32.totalorder %s1780_s22, %s1776_s21 }
  0x10   : > { %s2957_s29 = smov (%p40_p0, %s38_s29), 0  ;;  %p134_p5 = scmp.eq.s32.totalorder %s2914_s28, 1 }
  0x11   : > { %p1877_p4 = por %p128_p2, %p127_p1  ;;  %s112_s8 = ssub.s32 %s1792_s25, %s2957_s29 }
  0x12   : > { %p1371_p6 = scmp.ge.s32.totalorder %s1796_s26, 1  ;;  %p115_p7 = scmp.eq.s32.totalorder %s112_s8, 0 }
  0x13   : > { %p1886_p8 = por %p134_p5, %p133_p3  ;;  %p255_p9 = scmp.lt.s32.totalorder %s1796_s26, 3 }
  0x14   : > { %s1892_s10 = scalar_select %p115_p7, %s1784_s23, %s117_s30  }
  0x15   : > { %p256_p10 = pnand %p1371_p6, %p255_p9 }
  0x16   : > { %s2920_s1 = sld [smem:[#allocation13_spill]] (!%p256_p10)  ;;  %p304_p11 = scmp.lt.s32.totalorder (!%p256_p10), %s1788_s24, 1 }
  0x17   : > { %259 = sbr.rel (%p256_p10) target bundleno = 741 (0x2e5), region = 32  ;;  %s2921_s0 = sld [smem:[#allocation12_spill]] (!%p256_p10) }
  0x18   : > { %s2922_s2 = sld [smem:[#allocation14_spill]] (!%p256_p10)  ;;  %s2380_s16 = sand.u32 (!%p256_p10), 1, %s1780_s22  }
  0x19   : > { %s1373_s18 = sshll.u32 (!%p256_p10), %s2380_s16, 1  ;;  %s1542_s20 = sshll.u32 (!%p256_p10), %s1788_s24, 1 }
  0x1a   : > { %s2456_s19 = scalar_lea.vmem (!%p256_p10), [#allocation4], %s1373_s18  ;;  %s1162_s11 = scalar_lea.hbm (!%p256_p10), %s2896_s4, %s1542_s20 }
  0x1b   : > { %s1164_s12 = sshll.u32 (!%p256_p10), %s2456_s19, 4  ;;  %s1165_s12 = int_to_ptr.vmem [resolvable:$true] %s1164_s12 }
  0x1c   : > { %v1897_v0 = vld [vmem:[%s2920_s1] sm:$0xff]  ;;  %s305_s13 = scalar_select %p304_p11, %s1788_s24, 1  ;;  %v1798_v4 = vmov 0   ;;  %vm366_vm0 = vcmask 64512  }
  0x1d   : > { %334 = vxpose.xlu0.b32.start.end [1/1] (short) %v1897_v0, 128  ;;  %1622 = vset.pattern.permute.xlu1 %v1798_v4 }
  0x1e   : > { %s1546_s14 = sshll.u32 %s305_s13, 4  ;;  %v319_v3 = vld [vmem:[%s2922_s2 + $0x8] sm:$0xff]  ;;  %1623 = vset.pattern.permute.xlu2 %v1798_v4  ;;  %v320_v5 = vld [vmem:[%s2922_s2 + $0x10] sm:$0xff]  ;;  %v325_v9 = vld [vmem:[%s2922_s2 + $0x38] sm:$0xff]  ;;  %s1166_s13 = sshll.u32 %s1162_s11, 4  ;;  %s1167_s13 = int_to_ptr.hbm [resolvable:$true] %s1166_s13 }
  0x1f   : > { %s1905_s17 = scalar_lea.vmem %s2921_s0, %s1546_s14  ;;  %584 = vperm.xlu1 %1622, %v319_v3   ;;  %v323_v7 = vld [vmem:[%s2922_s2 + $0x28] sm:$0xff]  ;;  %v321_v13 = vld [vmem:[%s2922_s2 + $0x18] sm:$0xff]  ;;  %v322_v16 = vld [vmem:[%s2922_s2 + $0x20] sm:$0xff]  ;;  %s1640_s15 = sshra.s32 %s1167_s13, 4  ;;  %s1641_s15 = int_to_ptr.hbm [resolvable:$true] %s1640_s15 }
  0x20   : > { %v315_v1 = vld [vmem:[%s1905_s17] sm:$0xff]  ;;  %v316_v2 = vld [vmem:[%s1905_s17 + $0x8] sm:$0xff]  ;;  %v329_v14 = vld [vmem:[%s2922_s2 + $0x58] sm:$0xff]  ;;  %594 = vperm.xlu2 %1623, %v321_v13   ;;  %s1642_s18 = scalar_lea.hbm %s1641_s15, 2  ;;  %s1646_s0 = scalar_lea.hbm %s2896_s4, 4 }
  0x21   : > { %430 = vmatpush.msra.mxu0 %v315_v1  ;;  %495 = vmatpush.msra.mxu1 %v316_v2  ;;  %v327_v11 = vld [vmem:[%s2922_s2 + $0x48] sm:$0xff]  ;;  %v324_v19 = vld [vmem:[%s2922_s2 + $0x30] sm:$0xff]  ;;  %v333_v20 = vld [vmem:[%s2922_s2 + $0x78] sm:$0xff]  ;;  %p1643_p12 = scmp.ne.s32.totalorder %s1641_s15, %s1642_s18  ;;  %p1647_p1 = scmp.lt.s32.totalorder %s1641_s15, %s2896_s4 }
  0x22   : > { %v331_v17 = vld [vmem:[%s2922_s2 + $0x68] sm:$0xff]  ;;  %v326_v22 = vld [vmem:[%s2922_s2 + $0x40] sm:$0xff]  ;;  %v328_v24 = vld [vmem:[%s2922_s2 + $0x50] sm:$0xff]  ;;  %p1648_p2 = scmp.lt.s32.totalorder %s1646_s0, %s1642_s18 }
  0x23   : > { %v318_v25 = vld [vmem:[%s2922_s2] sm:$0xff]  ;;  %v332_v29 = vld [vmem:[%s2922_s2 + $0x70] sm:$0xff]  ;;  %p1644_p13 = pnand %p1643_p12, %p1877_p4 }
  0x24   : > { %v330_v27 = vld [vmem:[%s2922_s2 + $0x60] sm:$0xff]  ;;  %p1649_p3 = por %p1648_p2, %p1647_p1 }
  0x25   : > { %p1645_p0 = pneg %p1644_p13 }
  0x27   : > { %589 = vperm.xlu1 %1622, %v320_v5   ;;  %p1650_p5 = pnand %p1649_p3, %p1645_p0 }
  0x28   : > { %599 = vperm.xlu2 %1623, %v322_v16  }
  0x2f   : > { %604 = vperm.xlu1 %1622, %v323_v7  }
  0x30   : > { %609 = vperm.xlu2 %1623, %v324_v19  }
  0x37   : > { %614 = vperm.xlu1 %1622, %v325_v9  }
  0x38   : > { %619 = vperm.xlu2 %1623, %v326_v22  }
  0x3f   : > { %624 = vperm.xlu1 %1622, %v327_v11  }
  0x40   : > { %629 = vperm.xlu2 %1623, %v328_v24  }
  0x47   : > { %634 = vperm.xlu1 %1622, %v329_v14  }
  0x48   : > { %639 = vperm.xlu2 %1623, %v330_v27  }
  0x4f   : > { %644 = vperm.xlu1 %1622, %v331_v17  }
  0x50   : > { %649 = vperm.xlu2 %1623, %v332_v29  }
  0x57   : > { %654 = vperm.xlu1 %1622, %v333_v20  }
  0x7a   : > { %v595_v45 = vpop.permute.xlu2 %594 }
  0x82   : > { %v600_v5 = vpop.permute.xlu2 %599 }
  0x84   : > { %1621 = vset.pattern.permute.xlu0 %v1798_v4 }
  0x8a   : > { %v610_v27 = vpop.permute.xlu2 %609 }
  0x91   : > { %v585_v42 = vpop.permute.xlu1 %584 }
  0x99   : > { %v590_v56 = vpop.permute.xlu1 %589 }
  0xa1   : > { %v605_v63 = vpop.permute.xlu1 %604 }
  0xc1   : > { %v350_v6 = vpop.trf.xlu0 }
  0xc2   : > { %1377 = vmatmul.msk.f32.vlgmr.msra.gmra.mxu0 %vm366_vm0, %v350_v6  ;;  %1393 = vmatmul.msk.f32.vlgmr.msra.gmra.mxu1 %vm366_vm0, %v350_v6 }
  0xc9   : > { %v351_v8 = vpop.trf.xlu0 }
  0xca   : > { %1378 = vmatmul.msk.f32.gmra.mxu0 %vm366_vm0, %v351_v8  ;;  %1394 = vmatmul.msk.f32.gmra.mxu1 %vm366_vm0, %v351_v8 }
  0xd1   : > { %v352_v10 = vpop.trf.xlu0 }
  0xd2   : > { %1379 = vmatmul.msk.f32.gmra.mxu0 %vm366_vm0, %v352_v10  ;;  %1395 = vmatmul.msk.f32.gmra.mxu1 %vm366_vm0, %v352_v10 }
  0xd9   : > { %v353_v12 = vpop.trf.xlu0 }
  0xda   : > { %1380 = vmatmul.msk.f32.gmra.mxu0 %vm366_vm0, %v353_v12  ;;  %1396 = vmatmul.msk.f32.gmra.mxu1 %vm366_vm0, %v353_v12 }
  0xe1   : > { %v354_v15 = vpop.trf.xlu0 }
  0xe2   : > { %1381 = vmatmul.msk.f32.gmra.mxu0 %vm366_vm0, %v354_v15  ;;  %1397 = vmatmul.msk.f32.gmra.mxu1 %vm366_vm0, %v354_v15 }
  0xe9   : > { %v355_v18 = vpop.trf.xlu0 }
  0xea   : > { %1382 = vmatmul.msk.f32.gmra.mxu0 %vm366_vm0, %v355_v18  ;;  %1398 = vmatmul.msk.f32.gmra.mxu1 %vm366_vm0, %v355_v18 }
  0xf1   : > { %v356_v21 = vpop.trf.xlu0 }
  0xf2   : > { %1383 = vmatmul.msk.f32.gmra.mxu0 %vm366_vm0, %v356_v21  ;;  %1399 = vmatmul.msk.f32.gmra.mxu1 %vm366_vm0, %v356_v21 }
  0xf9   : > { %v357_v23 = vpop.trf.xlu0 }
  0xfa   : > { %1384 = vmatmul.msk.f32.gmra.mxu0 %vm366_vm0, %v357_v23  ;;  %1400 = vmatmul.msk.f32.gmra.mxu1 %vm366_vm0, %v357_v23 }
 0x101   : > { %v358_v26 = vpop.trf.xlu0 }
 0x102   : > { %1385 = vmatmul.msk.f32.gmra.mxu0 %vm366_vm0, %v358_v26  ;;  %1401 = vmatmul.msk.f32.gmra.mxu1 %vm366_vm0, %v358_v26 }
 0x103   : > { %579 = vperm.xlu0 %1621, %v318_v25  }
 0x109   : > { %v359_v28 = vpop.trf.xlu0 }
 0x10a   : > { %1386 = vmatmul.msk.f32.gmra.mxu0 %vm366_vm0, %v359_v28  ;;  %1402 = vmatmul.msk.f32.gmra.mxu1 %vm366_vm0, %v359_v28 }
 0x111   : > { %v360_v30 = vpop.trf.xlu0 }
 0x112   : > { %1387 = vmatmul.msk.f32.gmra.mxu0 %vm366_vm0, %v360_v30  ;;  %1403 = vmatmul.msk.f32.gmra.mxu1 %vm366_vm0, %v360_v30 }
 0x119   : > { %v361_v31 = vpop.trf.xlu0 }
 0x11a   : > { %1388 = vmatmul.msk.f32.gmra.mxu0 %vm366_vm0, %v361_v31  ;;  %1404 = vmatmul.msk.f32.gmra.mxu1 %vm366_vm0, %v361_v31 }
 0x121   : > { %v362_v32 = vpop.trf.xlu0 }
 0x122   : > { %1389 = vmatmul.msk.f32.gmra.mxu0 %vm366_vm0, %v362_v32  ;;  %1405 = vmatmul.msk.f32.gmra.mxu1 %vm366_vm0, %v362_v32 }
 0x129   : > { %v363_v33 = vpop.trf.xlu0 }
 0x12a   : > { %1390 = vmatmul.msk.f32.gmra.mxu0 %vm366_vm0, %v363_v33  ;;  %1406 = vmatmul.msk.f32.gmra.mxu1 %vm366_vm0, %v363_v33 }
 0x131   : > { %v364_v34 = vpop.trf.xlu0 }
 0x132   : > { %1391 = vmatmul.msk.f32.gmra.mxu0 %vm366_vm0, %v364_v34  ;;  %1407 = vmatmul.msk.f32.gmra.mxu1 %vm366_vm0, %v364_v34 }
 0x139   : > { %v365_v35 = vpop.trf.xlu0 }
 0x13a   : > { %1392 = vmatmul.msk.f32.gmra.mxu0 %vm366_vm0, %v365_v35  ;;  %1408 = vmatmul.msk.f32.gmra.mxu1 %vm366_vm0, %v365_v35 }
 0x13f   : > { %v432_v36 = vpop.f32.mrf.mxu0  ;;  %v497_v37 = vpop.f32.mrf.mxu1 }
 0x140   : > { %v545_v10 = vmul.f32 2.0, %v432_v36  ;;  %v546_v11 = vmul.f32 2.0, %v497_v37 }
 0x147   : > { %v435_v38 = vpop.f32.mrf.mxu0  ;;  %v500_v39 = vpop.f32.mrf.mxu1 }
 0x148   : > { %v547_v43 = vmul.f32 2.0, %v435_v38  ;;  %v548_v44 = vmul.f32 2.0, %v500_v39 }
 0x14a   : > { %v1989_v50 = vsub.f32 %v585_v42, %v547_v43  ;;  %v1991_v51 = vsub.f32 %v585_v42, %v548_v44  ;;  %v620_v43 = vpop.permute.xlu2 %619 }
 0x14f   : > { %v438_v40 = vpop.f32.mrf.mxu0  ;;  %v503_v41 = vpop.f32.mrf.mxu1 }
 0x150   : > { %v549_v8 = vmul.f32 2.0, %v438_v40  ;;  %v550_v9 = vmul.f32 2.0, %v503_v41  ;;  %v615_v40 = vpop.permute.xlu1 %614 }
 0x152   : > { %v2011_v14 = vsub.f32 %v590_v56, %v549_v8  ;;  %v2013_v15 = vsub.f32 %v590_v56, %v550_v9 }
 0x157   : > { %v441_v46 = vpop.f32.mrf.mxu0  ;;  %v506_v47 = vpop.f32.mrf.mxu1 }
 0x158   : > { %v551_v48 = vmul.f32 2.0, %v441_v46  ;;  %v552_v49 = vmul.f32 2.0, %v506_v47  ;;  %v625_v44 = vpop.permute.xlu1 %624  ;;  %v630_v47 = vpop.permute.xlu2 %629 }
 0x15a   : > { %v1993_v52 = vsub.f32 %v595_v45, %v551_v48  ;;  %v1995_v53 = vsub.f32 %v595_v45, %v552_v49 }
 0x15c   : > { %v690_v54 = vmin.f32 %v1989_v50, %v1993_v52  ;;  %v711_v55 = vmin.f32 %v1991_v51, %v1995_v53 }
 0x15f   : > { %v444_v57 = vpop.f32.mrf.mxu0  ;;  %v509_v58 = vpop.f32.mrf.mxu1 }
 0x160   : > { %v553_v12 = vmul.f32 2.0, %v444_v57  ;;  %v554_v13 = vmul.f32 2.0, %v509_v58  ;;  %v635_v48 = vpop.permute.xlu1 %634 }
 0x162   : > { %v2019_v23 = vsub.f32 %v600_v5, %v553_v12  ;;  %v2021_v24 = vsub.f32 %v600_v5, %v554_v13 }
 0x167   : > { %v447_v59 = vpop.f32.mrf.mxu0  ;;  %v512_v60 = vpop.f32.mrf.mxu1 }
 0x168   : > { %v555_v61 = vmul.f32 2.0, %v447_v59  ;;  %v556_v62 = vmul.f32 2.0, %v512_v60  ;;  %v640_v59 = vpop.permute.xlu2 %639  ;;  %v645_v5 = vpop.permute.xlu1 %644 }
 0x16a   : > { %v2001_v1 = vsub.f32 %v605_v63, %v555_v61  ;;  %v2003_v2 = vsub.f32 %v605_v63, %v556_v62 }
 0x16c   : > { %v2006_v3 = vmin.f32 %v690_v54, %v2001_v1  ;;  %v2009_v4 = vmin.f32 %v711_v55, %v2003_v2 }
 0x16f   : > { %v450_v6 = vpop.f32.mrf.mxu0  ;;  %v515_v7 = vpop.f32.mrf.mxu1 }
 0x170   : > { %v557_v17 = vmul.f32 2.0, %v450_v6  ;;  %v558_v18 = vmul.f32 2.0, %v515_v7 }
 0x172   : > { %v2027_v28 = vsub.f32 %v610_v27, %v557_v17  ;;  %v2029_v29 = vsub.f32 %v610_v27, %v558_v18 }
 0x175   : > { %v580_v16 = vpop.permute.xlu0 %579 }
 0x176   : > { %v2015_v19 = vsub.f32 %v580_v16, %v545_v10  ;;  %v2017_v20 = vsub.f32 %v580_v16, %v546_v11 }
 0x177   : > { %v453_v21 = vpop.f32.mrf.mxu0  ;;  %v518_v22 = vpop.f32.mrf.mxu1 }
 0x178   : > { %v689_v25 = vmin.f32 %v2015_v19, %v2011_v14  ;;  %v710_v26 = vmin.f32 %v2017_v20, %v2013_v15  ;;  %v559_v55 = vmul.f32 2.0, %v453_v21  ;;  %v560_v56 = vmul.f32 2.0, %v518_v22 }
 0x17a   : > { %v691_v30 = vmin.f32 %v689_v25, %v2019_v23  ;;  %v712_v31 = vmin.f32 %v710_v26, %v2021_v24  ;;  %v2035_v62 = vsub.f32 %v615_v40, %v559_v55  ;;  %v2037_v63 = vsub.f32 %v615_v40, %v560_v56 }
 0x17c   : > { %v693_v32 = vmin.f32 %v691_v30, %v2027_v28  ;;  %v714_v33 = vmin.f32 %v712_v31, %v2029_v29  ;;  %v694_v22 = vmin.f32 %v2006_v3, %v2035_v62  ;;  %v715_v25 = vmin.f32 %v2009_v4, %v2037_v63 }
 0x17f   : > { %v456_v34 = vpop.f32.mrf.mxu0  ;;  %v521_v35 = vpop.f32.mrf.mxu1 }
 0x180   : > { %v561_v57 = vmul.f32 2.0, %v456_v34  ;;  %v562_v58 = vmul.f32 2.0, %v521_v35 }
 0x182   : > { %v2039_v12 = vsub.f32 %v620_v43, %v561_v57  ;;  %v2041_v13 = vsub.f32 %v620_v43, %v562_v58  ;;  %v655_v57 = vpop.permute.xlu1 %654 }
 0x187   : > { %v459_v36 = vpop.f32.mrf.mxu0  ;;  %v524_v37 = vpop.f32.mrf.mxu1 }
 0x188   : > { %v563_v60 = vmul.f32 2.0, %v459_v36  ;;  %v564_v61 = vmul.f32 2.0, %v524_v37  ;;  %v695_v36 = vmin.f32 %v693_v32, %v2039_v12  ;;  %v716_v37 = vmin.f32 %v714_v33, %v2041_v13 }
 0x18a   : > { %v2043_v16 = vsub.f32 %v625_v44, %v563_v60  ;;  %v2045_v17 = vsub.f32 %v625_v44, %v564_v61 }
 0x18c   : > { %v696_v3 = vmin.f32 %v694_v22, %v2043_v16  ;;  %v717_v4 = vmin.f32 %v715_v25, %v2045_v17 }
 0x18f   : > { %v462_v38 = vpop.f32.mrf.mxu0  ;;  %v527_v39 = vpop.f32.mrf.mxu1 }
 0x190   : > { %v565_v6 = vmul.f32 2.0, %v462_v38  ;;  %v566_v7 = vmul.f32 2.0, %v527_v39 }
 0x192   : > { %v2051_v30 = vsub.f32 %v630_v47, %v565_v6  ;;  %v2053_v31 = vsub.f32 %v630_v47, %v566_v7 }
 0x194   : > { %v718_v32 = vmin.f32 %v716_v37, %v2053_v31 }
 0x197   : > { %v465_v41 = vpop.f32.mrf.mxu0  ;;  %v530_v42 = vpop.f32.mrf.mxu1 }
 0x198   : > { %v567_v8 = vmul.f32 2.0, %v465_v41  ;;  %v568_v9 = vmul.f32 2.0, %v530_v42  ;;  %v650_v42 = vpop.permute.xlu2 %649 }
 0x19a   : > { %v2055_v34 = vsub.f32 %v635_v48, %v567_v8  ;;  %v2057_v35 = vsub.f32 %v635_v48, %v568_v9 }
 0x19c   : > { %v698_v33 = vmin.f32 %v696_v3, %v2055_v34 }
 0x19f   : > { %v468_v45 = vpop.f32.mrf.mxu0  ;;  %v533_v46 = vpop.f32.mrf.mxu1 }
 0x1a0   : > { %v569_v18 = vmul.f32 2.0, %v468_v45  ;;  %v570_v21 = vmul.f32 2.0, %v533_v46  ;;  %v697_v45 = vmin.f32 %v695_v36, %v2051_v30  ;;  %v719_v46 = vmin.f32 %v717_v4, %v2057_v35 }
 0x1a2   : > { %v2063_v40 = vsub.f32 %v640_v59, %v569_v18  ;;  %v2065_v41 = vsub.f32 %v640_v59, %v570_v21 }
 0x1a4   : > { %v699_v58 = vmin.f32 %v697_v45, %v2063_v40  ;;  %v720_v59 = vmin.f32 %v718_v32, %v2065_v41 }
 0x1a7   : > { %v471_v49 = vpop.f32.mrf.mxu0  ;;  %v536_v54 = vpop.f32.mrf.mxu1 }
 0x1a8   : > { %v571_v26 = vmul.f32 2.0, %v471_v49  ;;  %v572_v27 = vmul.f32 2.0, %v536_v54 }
 0x1aa   : > { %v2067_v43 = vsub.f32 %v645_v5, %v571_v26  ;;  %v2069_v44 = vsub.f32 %v645_v5, %v572_v27  ;;  %v731_v27 = vlaneseq }
 0x1ac   : > { %v700_v60 = vmin.f32 %v698_v33, %v2067_v43  ;;  %v721_v61 = vmin.f32 %v719_v46, %v2069_v44 }
 0x1af   : > { %v474_v10 = vpop.f32.mrf.mxu0  ;;  %v539_v11 = vpop.f32.mrf.mxu1 }
 0x1b0   : > { %v573_v38 = vmul.f32 2.0, %v474_v10  ;;  %v574_v39 = vmul.f32 2.0, %v539_v11 }
 0x1b2   : > { %v2075_v49 = vsub.f32 %v650_v42, %v573_v38  ;;  %v2077_v54 = vsub.f32 %v650_v42, %v574_v39  ;;  %v2092_v39 = vshrl.u32 %v731_v27, 7 }
 0x1b4   : > { %v701_v7 = vmin.f32 %v699_v58, %v2075_v49  ;;  %v722_v8 = vmin.f32 %v720_v59, %v2077_v54  ;;  %v2097_v45 = vadd.s32 8, %v2092_v39  ;;  %v2100_v32 = vadd.s32 16, %v2092_v39 }
 0x1b5   : > { %v2103_v33 = vadd.s32 24, %v2092_v39  ;;  %v2135_v58 = vadd.s32 72, %v2092_v39  ;;  %v2138_v59 = vadd.s32 80, %v2092_v39 }
 0x1b7   : > { %v477_v47 = vpop.f32.mrf.mxu0  ;;  %v542_v48 = vpop.f32.mrf.mxu1 }
 0x1b8   : > { %v575_v55 = vmul.f32 2.0, %v477_v47  ;;  %v576_v56 = vmul.f32 2.0, %v542_v48  ;;  %v2114_v47 = vadd.s32 32, %v2092_v39  ;;  %v2123_v48 = vadd.s32 40, %v2092_v39 }
 0x1ba   : > { %v2083_v5 = vsub.f32 %v655_v57, %v575_v55  ;;  %v2085_v6 = vsub.f32 %v655_v57, %v576_v56  ;;  %v2126_v55 = vadd.s32 48, %v2092_v39  ;;  %v2129_v56 = vadd.s32 56, %v2092_v39 }
 0x1bb   : > { %v2132_v57 = vadd.s32 64, %v2092_v39 }
 0x1bc   : > { %v702_v9 = vmin.f32 %v700_v60, %v2083_v5  ;;  %v723_v10 = vmin.f32 %v721_v61, %v2085_v6  ;;  %v2141_v60 = vadd.s32 88, %v2092_v39  ;;  %v2144_v61 = vadd.s32 96, %v2092_v39 }
 0x1be   : > { %v703_v11 = vmin.f32 %v701_v7, %v702_v9  ;;  %v724_v18 = vmin.f32 %v722_v8, %v723_v10  ;;  %v2147_v7 = vadd.s32 104, %v2092_v39  ;;  %v2150_v8 = vadd.s32 112, %v2092_v39 }
 0x1bf   : > { %v2153_v9 = vadd.s32 120, %v2092_v39 }
 0x1c0   : > { %v704_v21 = vrot.slane %v703_v11, 4  ;;  %v725_v22 = vrot.slane %v724_v18, 4 }
 0x1c2   : > { %v705_v25 = vmin.f32 %v703_v11, %v704_v21  ;;  %v726_v26 = vmin.f32 %v724_v18, %v725_v22 }
 0x1c4   : > { %v706_v36 = vrot.slane %v705_v25, 2  ;;  %v727_v37 = vrot.slane %v726_v26, 2 }
 0x1c6   : > { %v707_v38 = vmin.f32 %v705_v25, %v706_v36  ;;  %v728_v3 = vmin.f32 %v726_v26, %v727_v37 }
 0x1c8   : > { %v708_v4 = vrot.slane %v707_v38, 1  ;;  %v729_v46 = vrot.slane %v728_v3, 1 }
 0x1ca   : > { %v2094_v42 = vmin.f32 %v707_v38, %v708_v4  ;;  %v2155_v10 = vmin.f32 %v728_v3, %v729_v46 }
 0x1cc   : > { %vm748_vm1 = vcmp.le.f32.partialorder %v2015_v19, %v2094_v42  ;;  %vm750_vm2 = vcmp.le.f32.partialorder %v1989_v50, %v2094_v42  ;;  %vm752_vm3 = vcmp.le.f32.partialorder %v2011_v14, %v2094_v42  ;;  %vm754_vm4 = vcmp.le.f32.partialorder %v1993_v52, %v2094_v42 }
 0x1cd   : > { %vm756_vm5 = vcmp.le.f32.partialorder %v2019_v23, %v2094_v42  ;;  %vm758_vm6 = vcmp.le.f32.partialorder %v2001_v1, %v2094_v42  ;;  %vm760_vm7 = vcmp.le.f32.partialorder %v2027_v28, %v2094_v42  ;;  %v780_v11 = vsel %vm748_vm1, %v2092_v39, 128 }
 0x1ce   : > { %v782_v18 = vsel %vm750_vm2, %v2097_v45, 128  ;;  %v784_v21 = vsel %vm752_vm3, %v2100_v32, 128  ;;  %v786_v22 = vsel %vm754_vm4, %v2103_v33, 128  ;;  %vm762_vm8 = vcmp.le.f32.partialorder %v2035_v62, %v2094_v42 }
 0x1cf   : > { %vm764_vm9 = vcmp.le.f32.partialorder %v2039_v12, %v2094_v42  ;;  %vm766_vm10 = vcmp.le.f32.partialorder %v2043_v16, %v2094_v42  ;;  %vm768_vm11 = vcmp.le.f32.partialorder %v2051_v30, %v2094_v42  ;;  %vm770_vm12 = vcmp.le.f32.partialorder %v2055_v34, %v2094_v42 }
 0x1d0   : > { %v788_v50 = vsel %vm756_vm5, %v2114_v47, 128  ;;  %v790_v52 = vsel %vm758_vm6, %v2123_v48, 128  ;;  %v792_v14 = vsel %vm760_vm7, %v2126_v55, 128  ;;  %vm812_vm13 = vcmp.lt.s32.totalorder %v780_v11, %v784_v21 }
 0x1d1   : > { %vm814_vm14 = vcmp.lt.s32.totalorder %v782_v18, %v786_v22  ;;  %vm749_vm15 = vcmp.le.f32.partialorder %v2017_v20, %v2155_v10  ;;  %vm751_vm0 = vcmp.le.f32.partialorder %v1991_v51, %v2155_v10  ;;  %v813_v19 = vsel %vm812_vm13, %v780_v11, %v784_v21 }
 0x1d2   : > { %v815_v23 = vsel %vm814_vm14, %v782_v18, %v786_v22  ;;  %vm753_vm1 = vcmp.le.f32.partialorder %v2013_v15, %v2155_v10  ;;  %vm816_vm3 = vcmp.lt.s32.totalorder %v813_v19, %v788_v50  ;;  %vm759_vm6 = vcmp.le.f32.partialorder %v2003_v2, %v2155_v10 }
 0x1d3   : > { %vm818_vm4 = vcmp.lt.s32.totalorder %v815_v23, %v790_v52  ;;  %v794_v1 = vsel %vm762_vm8, %v2129_v56, 128  ;;  %v817_v28 = vsel %vm816_vm3, %v813_v19, %v788_v50  ;;  %vm772_vm13 = vcmp.le.f32.partialorder %v2063_v40, %v2094_v42 }
 0x1d4   : > { %v819_v25 = vsel %vm818_vm4, %v815_v23, %v790_v52  ;;  %vm774_vm14 = vcmp.le.f32.partialorder %v2067_v43, %v2094_v42  ;;  %vm820_vm5 = vcmp.lt.s32.totalorder %v817_v28, %v792_v14  ;;  %v796_v26 = vsel %vm764_vm9, %v2132_v57, 128 }
 0x1d5   : > { %vm822_vm2 = vcmp.lt.s32.totalorder %v819_v25, %v794_v1  ;;  %v798_v62 = vsel %vm766_vm10, %v2135_v58, 128  ;;  %v821_v36 = vsel %vm820_vm5, %v817_v28, %v792_v14  ;;  %vm776_vm8 = vcmp.le.f32.partialorder %v2075_v49, %v2094_v42 }
 0x1d6   : > { %v823_v37 = vsel %vm822_vm2, %v819_v25, %v794_v1  ;;  %vm778_vm3 = vcmp.le.f32.partialorder %v2083_v5, %v2094_v42  ;;  %vm824_vm4 = vcmp.lt.s32.totalorder %v821_v36, %v796_v26  ;;  %v800_v12 = vsel %vm768_vm11, %v2138_v59, 128 }
 0x1d7   : > { %vm826_vm7 = vcmp.lt.s32.totalorder %v823_v37, %v798_v62  ;;  %v802_v16 = vsel %vm770_vm12, %v2141_v60, 128  ;;  %v825_v38 = vsel %vm824_vm4, %v821_v36, %v796_v26  ;;  %v804_v49 = vsel %vm772_vm13, %v2144_v61, 128 }
 0x1d8   : > { %v827_v3 = vsel %vm826_vm7, %v823_v37, %v798_v62  ;;  %v806_v5 = vsel %vm774_vm14, %v2147_v7, 128  ;;  %vm828_vm9 = vcmp.lt.s32.totalorder %v825_v38, %v800_v12  ;;  %v808_v30 = vsel %vm776_vm8, %v2150_v8, 128 }
 0x1d9   : > { %vm830_vm10 = vcmp.lt.s32.totalorder %v827_v3, %v802_v16  ;;  %v810_v4 = vsel %vm778_vm3, %v2153_v9, 128  ;;  %v829_v34 = vsel %vm828_vm9, %v825_v38, %v800_v12  ;;  %vm763_vm2 = vcmp.le.f32.partialorder %v2037_v63, %v2155_v10 }
 0x1da   : > { %v831_v46 = vsel %vm830_vm10, %v827_v3, %v802_v16  ;;  %vm832_vm11 = vcmp.lt.s32.totalorder %v829_v34, %v804_v49  ;;  %vm765_vm5 = vcmp.le.f32.partialorder %v2041_v13, %v2155_v10  ;;  %v781_v43 = vsel %vm749_vm15, %v2092_v39, 128 }
 0x1db   : > { %vm834_vm12 = vcmp.lt.s32.totalorder %v831_v46, %v806_v5  ;;  %v833_v40 = vsel %vm832_vm11, %v829_v34, %v804_v49  ;;  %v783_v42 = vsel %vm751_vm0, %v2097_v45, 128  ;;  %v785_v18 = vsel %vm753_vm1, %v2100_v32, 128 }
 0x1dc   : > { %v835_v11 = vsel %vm834_vm12, %v831_v46, %v806_v5  ;;  %vm836_vm7 = vcmp.lt.s32.totalorder %v833_v40, %v808_v30  ;;  %vm2923_vm14 = vcmp.le.f32.partialorder %v1995_v53, %v2155_v10  ;;  %vm767_vm15 = vcmp.le.f32.partialorder %v2045_v17, %v2155_v10 }
 0x1dd   : > { %vm838_vm13 = vcmp.lt.s32.totalorder %v835_v11, %v810_v4  ;;  %v787_v21 = vsel %vm2923_vm14, %v2103_v33, 128  ;;  %v837_v22 = vsel %vm836_vm7, %v833_v40, %v808_v30  ;;  %vm769_vm0 = vcmp.le.f32.partialorder %v2053_v31, %v2155_v10 }
 0x1de   : > { %v839_v20 = vsel %vm838_vm13, %v835_v11, %v810_v4  ;;  %vm771_vm3 = vcmp.le.f32.partialorder %v2057_v35, %v2155_v10  ;;  %vm773_vm1 = vcmp.le.f32.partialorder %v2065_v41, %v2155_v10  ;;  %vm775_vm4 = vcmp.le.f32.partialorder %v2069_v44, %v2155_v10 }
 0x1df   : > { %vm840_vm8 = vcmp.lt.s32.totalorder %v837_v22, %v839_v20  ;;  %vm2924_vm9 = vcmp.le.f32.partialorder %v2021_v24, %v2155_v10  ;;  %vm851_vm10 = vcmp.lt.s32.totalorder %v781_v43, %v785_v18  ;;  %vm853_vm11 = vcmp.lt.s32.totalorder %v783_v42, %v787_v21 }
 0x1e0   : > { %v841_v51 = vsel %vm840_vm8, %v837_v22, %v839_v20  ;;  %v789_v53 = vsel %vm2924_vm9, %v2114_v47, 128  ;;  %v791_v50 = vsel %vm759_vm6, %v2123_v48, 128  ;;  %v852_v52 = vsel %vm851_vm10, %v781_v43, %v785_v18 }
 0x1e1   : > { %v842_v15 = vrot.slane %v841_v51, 4  ;;  %v854_v14 = vsel %vm853_vm11, %v783_v42, %v787_v21  ;;  %vm777_vm12 = vcmp.le.f32.partialorder %v2077_v54, %v2155_v10  ;;  %vm2925_vm7 = vcmp.le.f32.partialorder %v2029_v29, %v2155_v10 }
 0x1e2   : > { %v793_v19 = vsel %vm2925_vm7, %v2126_v55, 128  ;;  %vm855_vm13 = vcmp.lt.s32.totalorder %v852_v52, %v789_v53  ;;  %vm857_vm14 = vcmp.lt.s32.totalorder %v854_v14, %v791_v50  ;;  %v795_v24 = vsel %vm763_vm2, %v2129_v56, 128 }
 0x1e3   : > { %vm843_vm8 = vcmp.lt.s32.totalorder %v841_v51, %v842_v15  ;;  %v856_v2 = vsel %vm855_vm13, %v852_v52, %v789_v53  ;;  %v858_v23 = vsel %vm857_vm14, %v854_v14, %v791_v50  ;;  %v797_v28 = vsel %vm765_vm5, %v2132_v57, 128 }
 0x1e4   : > { %v844_v1 = vsel %vm843_vm8, %v841_v51, %v842_v15  ;;  %vm859_vm6 = vcmp.lt.s32.totalorder %v856_v2, %v793_v19  ;;  %vm861_vm9 = vcmp.lt.s32.totalorder %v858_v23, %v795_v24  ;;  %v799_v25 = vsel %vm767_vm15, %v2135_v58, 128 }
 0x1e5   : > { %v845_v29 = vrot.slane %v844_v1, 2  ;;  %v860_v26 = vsel %vm859_vm6, %v856_v2, %v793_v19  ;;  %v862_v62 = vsel %vm861_vm9, %v858_v23, %v795_v24  ;;  %vm779_vm2 = vcmp.le.f32.partialorder %v2085_v6, %v2155_v10 }
 0x1e6   : > { %v801_v63 = vsel %vm769_vm0, %v2138_v59, 128  ;;  %vm863_vm10 = vcmp.lt.s32.totalorder %v860_v26, %v797_v28  ;;  %vm865_vm5 = vcmp.lt.s32.totalorder %v862_v62, %v799_v25  ;;  %v803_v13 = vsel %vm771_vm3, %v2141_v60, 128 }
 0x1e7   : > { %vm846_vm11 = vcmp.lt.s32.totalorder %v844_v1, %v845_v29  ;;  %v864_v17 = vsel %vm863_vm10, %v860_v26, %v797_v28  ;;  %v866_v36 = vsel %vm865_vm5, %v862_v62, %v799_v25  ;;  %v805_v12 = vsel %vm773_vm1, %v2144_v61, 128 }
 0x1e8   : > { %v847_v37 = vsel %vm846_vm11, %v844_v1, %v845_v29  ;;  %vm867_vm15 = vcmp.lt.s32.totalorder %v864_v17, %v801_v63  ;;  %vm869_vm7 = vcmp.lt.s32.totalorder %v866_v36, %v803_v13  ;;  %v807_v16 = vsel %vm775_vm4, %v2147_v7, 128 }
 0x1e9   : > { %v848_v31 = vrot.slane %v847_v37, 1  ;;  %v868_v38 = vsel %vm867_vm15, %v864_v17, %v801_v63  ;;  %v870_v3 = vsel %vm869_vm7, %v866_v36, %v803_v13  ;;  %v809_v35 = vsel %vm777_vm12, %v2150_v8, 128 }
 0x1ea   : > { %v811_v41 = vsel %vm779_vm2, %v2153_v9, 128  ;;  %vm871_vm0 = vcmp.lt.s32.totalorder %v868_v38, %v805_v12  ;;  %vm873_vm3 = vcmp.lt.s32.totalorder %v870_v3, %v807_v16  ;;  %v1799_v54 = vmov 1.0  }
 0x1eb   : > { %vm849_vm1 = vcmp.lt.s32.totalorder %v847_v37, %v848_v31  ;;  %v872_v49 = vsel %vm871_vm0, %v868_v38, %v805_v12  ;;  %v874_v5 = vsel %vm873_vm3, %v870_v3, %v807_v16 }
 0x1ec   : > { %v2329_v30 = vsel %vm849_vm1, %v847_v37, %v848_v31  ;;  %vm875_vm4 = vcmp.lt.s32.totalorder %v872_v49, %v809_v35  ;;  %vm877_vm13 = vcmp.lt.s32.totalorder %v874_v5, %v811_v41 }
 0x1ed   : > { %v876_v44 = vsel %vm875_vm4, %v872_v49, %v809_v35  ;;  %v878_v4 = vsel %vm877_vm13, %v874_v5, %v811_v41  ;;  %vm920_vm14 = vcmp.eq.s32.totalorder %v2153_v9, %v2329_v30  ;;  %vm918_vm8 = vcmp.eq.s32.totalorder %v2150_v8, %v2329_v30 }
 0x1ee   : > { %vm879_vm12 = vcmp.lt.s32.totalorder %v876_v44, %v878_v4  ;;  %1441 = vmatpush.msk.msra.mxu2 %vm920_vm14, %v1799_v54  ;;  %1505 = vmatpush.xpose.msk.msrb.mxu0 %vm920_vm14, %v1799_v54  ;;  %vm916_vm6 = vcmp.eq.s32.totalorder %v2147_v7, %v2329_v30  ;;  %vm2901_vm2 = vcmp.eq.s32.totalorder %v2144_v61, %v2329_v30  ;;  %vm1029_vm4 = vcmask 1040384  }
 0x1ef   : > { %v880_v6 = vsel %vm879_vm12, %v876_v44, %v878_v4  ;;  %vm2900_vm10 = vcmp.eq.s32.totalorder %v2141_v60, %v2329_v30  ;;  %vm2903_vm11 = vcmp.eq.s32.totalorder %v2138_v59, %v2329_v30  ;;  %vm2906_vm15 = vcmp.eq.s32.totalorder %v2135_v58, %v2329_v30 }
 0x1f0   : > { %v881_v10 = vrot.slane %v880_v6, 4  ;;  %1442 = vmatpush.msk.msra.mxu2 %vm918_vm8, %v1799_v54  ;;  %vm2910_vm0 = vcmp.eq.s32.totalorder %v2132_v57, %v2329_v30  ;;  %vm904_vm1 = vcmp.eq.s32.totalorder %v2129_v56, %v2329_v30  ;;  %vm1033_vm12 = vcmp.lt.s32.totalorder %v731_v27, 256 }
 0x1f2   : > { %vm882_vm9 = vcmp.lt.s32.totalorder %v880_v6, %v881_v10  ;;  %1443 = vmatpush.msk.msra.mxu2 %vm916_vm6, %v1799_v54  ;;  %1506 = vmatpush.xpose.msk.msrb.mxu0 %vm918_vm8, %v1799_v54 }
 0x1f3   : > { %v883_v34 = vsel %vm882_vm9, %v880_v6, %v881_v10  ;;  %vm902_vm9 = vcmp.eq.s32.totalorder %v2126_v55, %v2329_v30 }
 0x1f4   : > { %v884_v46 = vrot.slane %v883_v34, 2  ;;  %1444 = vmatpush.msk.msra.mxu2 %vm2901_vm2, %v1799_v54 }
 0x1f6   : > { %vm885_vm5 = vcmp.lt.s32.totalorder %v883_v34, %v884_v46  ;;  %1445 = vmatpush.msk.msra.mxu2 %vm2900_vm10, %v1799_v54  ;;  %1507 = vmatpush.xpose.msk.msrb.mxu0 %vm916_vm6, %v1799_v54 }
 0x1f7   : > { %v886_v40 = vsel %vm885_vm5, %v883_v34, %v884_v46 }
 0x1f8   : > { %v887_v11 = vrot.slane %v886_v40, 1  ;;  %1446 = vmatpush.msk.msra.mxu2 %vm2903_vm11, %v1799_v54 }
 0x1fa   : > { %vm888_vm7 = vcmp.lt.s32.totalorder %v886_v40, %v887_v11  ;;  %1447 = vmatpush.msk.msra.mxu2 %vm2906_vm15, %v1799_v54  ;;  %1508 = vmatpush.xpose.msk.msrb.mxu0 %vm2901_vm2, %v1799_v54 }
 0x1fb   : > { %v2392_v43 = vsel %vm888_vm7, %v886_v40, %v887_v11 }
 0x1fc   : > { %vm2899_vm3 = vcmp.eq.s32.totalorder %v2153_v9, %v2392_v43  ;;  %1448 = vmatpush.msk.msra.mxu2 %vm2910_vm0, %v1799_v54  ;;  %v1028_v42 = vrot.slane %v2392_v43, 7  ;;  %vm2902_vm13 = vcmp.eq.s32.totalorder %v2150_v8, %v2392_v43  ;;  %vm899_vm5 = vcmp.eq.s32.totalorder %v2114_v47, %v2392_v43 }
 0x1fd   : > { %1457 = vmatpush.msk.msra.mxu3 %vm2899_vm3, %v1799_v54  ;;  %1521 = vmatpush.xpose.msk.msrb.mxu1 %vm2899_vm3, %v1799_v54  ;;  %vm897_vm7 = vcmp.eq.s32.totalorder %v2103_v33, %v2392_v43  ;;  %vm2912_vm3 = vcmp.eq.s32.totalorder %v2123_v48, %v2329_v30  ;;  %vm911_vm2 = vcmp.eq.s32.totalorder %v2138_v59, %v2392_v43 }
 0x1fe   : > { %1449 = vmatpush.msk.msra.mxu2 %vm904_vm1, %v1799_v54  ;;  %1509 = vmatpush.xpose.msk.msrb.mxu0 %vm2900_vm10, %v1799_v54  ;;  %vm2904_vm10 = vcmp.eq.s32.totalorder %v2147_v7, %v2392_v43  ;;  %v1030_v27 = vsel %vm1029_vm4, %v2329_v30, %v1028_v42  ;;  %vm2908_vm4 = vcmp.eq.s32.totalorder %v2144_v61, %v2392_v43 }
 0x1ff   : > { %1458 = vmatpush.msk.msra.mxu3 %vm2902_vm13, %v1799_v54  ;;  %1035 = vst.msk [vmem:[%s2456_s19] sm:$0x3] %vm1033_vm12, %v1030_v27  ;;  %vm2905_vm12 = vcmp.eq.s32.totalorder %v2114_v47, %v2329_v30 }
 0x200   : > { %1450 = vmatpush.msk.msra.mxu2 %vm902_vm9, %v1799_v54 }
 0x201   : > { %1459 = vmatpush.msk.msra.mxu3 %vm2904_vm10, %v1799_v54  ;;  %1522 = vmatpush.xpose.msk.msrb.mxu1 %vm2902_vm13, %v1799_v54  ;;  %vm2911_vm13 = vcmp.eq.s32.totalorder %v2141_v60, %v2392_v43 }
 0x202   : > { %1451 = vmatpush.msk.msra.mxu2 %vm2912_vm3, %v1799_v54  ;;  %1510 = vmatpush.xpose.msk.msrb.mxu0 %vm2903_vm11, %v1799_v54  ;;  %vm2907_vm11 = vcmp.eq.s32.totalorder %v2103_v33, %v2329_v30 }
 0x203   : > { %1460 = vmatpush.msk.msra.mxu3 %vm2908_vm4, %v1799_v54 }
 0x204   : > { %1452 = vmatpush.msk.msra.mxu2 %vm2905_vm12, %v1799_v54  ;;  %vm909_vm12 = vcmp.eq.s32.totalorder %v2135_v58, %v2392_v43 }
 0x205   : > { %1461 = vmatpush.msk.msra.mxu3 %vm2911_vm13, %v1799_v54  ;;  %1523 = vmatpush.xpose.msk.msrb.mxu1 %vm2904_vm10, %v1799_v54  ;;  %vm2909_vm10 = vcmp.eq.s32.totalorder %v2100_v32, %v2329_v30 }
 0x206   : > { %1453 = vmatpush.msk.msra.mxu2 %vm2907_vm11, %v1799_v54  ;;  %1511 = vmatpush.xpose.msk.msrb.mxu0 %vm2906_vm15, %v1799_v54  ;;  %vm892_vm15 = vcmp.eq.s32.totalorder %v2097_v45, %v2329_v30  ;;  %vm907_vm11 = vcmp.eq.s32.totalorder %v2132_v57, %v2392_v43 }
 0x207   : > { %1462 = vmatpush.msk.msra.mxu3 %vm911_vm2, %v1799_v54 }
 0x208   : > { %1454 = vmatpush.msk.msra.mxu2 %vm2909_vm10, %v1799_v54  ;;  %vm2913_vm10 = vcmp.eq.s32.totalorder %v2129_v56, %v2392_v43 }
 0x209   : > { %1463 = vmatpush.msk.msra.mxu3 %vm909_vm12, %v1799_v54  ;;  %1524 = vmatpush.xpose.msk.msrb.mxu1 %vm2908_vm4, %v1799_v54  ;;  %vm890_vm4 = vcmp.eq.s32.totalorder %v2092_v39, %v2329_v30 }
 0x20a   : > { %1455 = vmatpush.msk.msra.mxu2 %vm892_vm15, %v1799_v54  ;;  %1512 = vmatpush.xpose.msk.msrb.mxu0 %vm2910_vm0, %v1799_v54  ;;  %vm903_vm0 = vcmp.eq.s32.totalorder %v2126_v55, %v2392_v43 }
 0x20b   : > { %1464 = vmatpush.msk.msra.mxu3 %vm907_vm11, %v1799_v54 }
 0x20c   : > { %1456 = vmatpush.msk.msra.mxu2 %vm890_vm4, %v1799_v54 }
 0x20d   : > { %1465 = vmatpush.msk.msra.mxu3 %vm2913_vm10, %v1799_v54  ;;  %1525 = vmatpush.xpose.msk.msrb.mxu1 %vm2911_vm13, %v1799_v54  ;;  %vm901_vm13 = vcmp.eq.s32.totalorder %v2123_v48, %v2392_v43 }
 0x20e   : > { %1473 = vmatpush.xpose.msk.msrb.mxu2 %vm920_vm14, %v1799_v54  ;;  %1513 = vmatpush.xpose.msk.msrb.mxu0 %vm904_vm1, %v1799_v54  ;;  %vm2926_vm14 = vcmp.eq.s32.totalorder %v2100_v32, %v2392_v43 }
 0x20f   : > { %1466 = vmatpush.msk.msra.mxu3 %vm903_vm0, %v1799_v54  ;;  %1002 = vmatmul.f32.vlgmr.msra.gmra.mxu2 %v1897_v0 }
 0x211   : > { %1467 = vmatpush.msk.msra.mxu3 %vm901_vm13, %v1799_v54  ;;  %1526 = vmatpush.xpose.msk.msrb.mxu1 %vm911_vm2, %v1799_v54 }
 0x212   : > { %1474 = vmatpush.xpose.msk.msrb.mxu2 %vm918_vm8, %v1799_v54  ;;  %1514 = vmatpush.xpose.msk.msrb.mxu0 %vm902_vm9, %v1799_v54  ;;  %vm2927_vm8 = vcmp.eq.s32.totalorder %v2097_v45, %v2392_v43 }
 0x213   : > { %1468 = vmatpush.msk.msra.mxu3 %vm899_vm5, %v1799_v54 }
 0x215   : > { %1469 = vmatpush.msk.msra.mxu3 %vm897_vm7, %v1799_v54  ;;  %1527 = vmatpush.xpose.msk.msrb.mxu1 %vm909_vm12, %v1799_v54 }
 0x216   : > { %1475 = vmatpush.xpose.msk.msrb.mxu2 %vm916_vm6, %v1799_v54  ;;  %1515 = vmatpush.xpose.msk.msrb.mxu0 %vm2912_vm3, %v1799_v54  ;;  %vm891_vm6 = vcmp.eq.s32.totalorder %v2092_v39, %v2392_v43  ;;  %vm2928_vm3 = vcmp.eq.s32.totalorder %v2144_v61, %v2329_v30 }
 0x217   : > { %1470 = vmatpush.msk.msra.mxu3 %vm2926_vm14, %v1799_v54  ;;  %vm2929_vm14 = vcmp.eq.s32.totalorder %v2114_v47, %v2329_v30 }
 0x219   : > { %1471 = vmatpush.msk.msra.mxu3 %vm2927_vm8, %v1799_v54  ;;  %1528 = vmatpush.xpose.msk.msrb.mxu1 %vm907_vm11, %v1799_v54  ;;  %vm2930_vm8 = vcmp.eq.s32.totalorder %v2153_v9, %v2392_v43 }
 0x21a   : > { %1476 = vmatpush.xpose.msk.msrb.mxu2 %vm2928_vm3, %v1799_v54  ;;  %1516 = vmatpush.xpose.msk.msrb.mxu0 %vm2929_vm14, %v1799_v54  ;;  %vm2931_vm3 = vcmp.eq.s32.totalorder %v2141_v60, %v2329_v30  ;;  %vm2932_vm14 = vcmp.eq.s32.totalorder %v2103_v33, %v2329_v30 }
 0x21b   : > { %1472 = vmatpush.msk.msra.mxu3 %vm891_vm6, %v1799_v54 }
 0x21c   : > { %1022 = vmatmul.f32.vlgmr.msra.gmra.mxu3 %v1897_v0  ;;  %v1624_v0 = vld [vmem:[%s1905_s17] sm:$0xff] }
 0x21d   : > { %1489 = vmatpush.xpose.msk.msrb.mxu3 %vm2930_vm8, %v1799_v54  ;;  %1529 = vmatpush.xpose.msk.msrb.mxu1 %vm2913_vm10, %v1799_v54  ;;  %vm2933_vm8 = vcmp.eq.s32.totalorder %v2150_v8, %v2392_v43  ;;  %vm2935_vm10 = vcmp.eq.s32.totalorder %v2100_v32, %v2329_v30 }
 0x21e   : > { %1477 = vmatpush.xpose.msk.msrb.mxu2 %vm2931_vm3, %v1799_v54  ;;  %1517 = vmatpush.xpose.msk.msrb.mxu0 %vm2932_vm14, %v1799_v54  ;;  %vm2934_vm3 = vcmp.eq.s32.totalorder %v2138_v59, %v2329_v30  ;;  %vm2936_vm14 = vcmp.eq.s32.totalorder %v2147_v7, %v2392_v43 }
 0x221   : > { %1490 = vmatpush.xpose.msk.msrb.mxu3 %vm2933_vm8, %v1799_v54  ;;  %1530 = vmatpush.xpose.msk.msrb.mxu1 %vm903_vm0, %v1799_v54  ;;  %vm2937_vm8 = vcmp.eq.s32.totalorder %v2135_v58, %v2329_v30  ;;  %v1625_v58 = vld [vmem:[%s1905_s17 + $0x8] sm:$0xff]  ;;  %s2799_s17 = sand.u32 1, %s1367_s27  }
 0x222   : > { %1478 = vmatpush.xpose.msk.msrb.mxu2 %vm2934_vm3, %v1799_v54  ;;  %1518 = vmatpush.xpose.msk.msrb.mxu0 %vm2935_vm10, %v1799_v54  ;;  %vm2938_vm10 = vcmp.eq.s32.totalorder %v2144_v61, %v2392_v43  ;;  %vm2939_vm3 = vcmp.eq.s32.totalorder %v2132_v57, %v2329_v30  ;;  %s1124_s14 = scalar_lea.sflag [#allocation5], %s2799_s17 }
 0x225   : > { %1491 = vmatpush.xpose.msk.msrb.mxu3 %vm2936_vm14, %v1799_v54  ;;  %1531 = vmatpush.xpose.msk.msrb.mxu1 %vm901_vm13, %v1799_v54  ;;  %vm2940_vm14 = vcmp.eq.s32.totalorder %v2141_v60, %v2392_v43 }
 0x226   : > { %1479 = vmatpush.xpose.msk.msrb.mxu2 %vm2937_vm8, %v1799_v54  ;;  %1519 = vmatpush.xpose.msk.msrb.mxu0 %vm892_vm15, %v1799_v54  ;;  %vm2941_vm8 = vcmp.eq.s32.totalorder %v2100_v32, %v2392_v43 }
 0x229   : > { %1492 = vmatpush.xpose.msk.msrb.mxu3 %vm2938_vm10, %v1799_v54  ;;  %1532 = vmatpush.xpose.msk.msrb.mxu1 %vm899_vm5, %v1799_v54  ;;  %vm2947_vm10 = vcmp.eq.s32.totalorder %v2100_v32, %v2329_v30 }
 0x22a   : > { %1480 = vmatpush.xpose.msk.msrb.mxu2 %vm2939_vm3, %v1799_v54  ;;  %1520 = vmatpush.xpose.msk.msrb.mxu0 %vm890_vm4, %v1799_v54 }
 0x22d   : > { %1493 = vmatpush.xpose.msk.msrb.mxu3 %vm2940_vm14, %v1799_v54  ;;  %1533 = vmatpush.xpose.msk.msrb.mxu1 %vm897_vm7, %v1799_v54 }
 0x22e   : > { %1093 = vmatmul.f32.vlgmr.msrb.gmra.mxu0 %v1624_v0  ;;  %1481 = vmatpush.xpose.msk.msrb.mxu2 %vm904_vm1, %v1799_v54  ;;  %vm2942_vm1 = vcmp.eq.s32.totalorder %v2097_v45, %v2392_v43 }
 0x231   : > { %1494 = vmatpush.xpose.msk.msrb.mxu3 %vm911_vm2, %v1799_v54  ;;  %1534 = vmatpush.xpose.msk.msrb.mxu1 %vm2941_vm8, %v1799_v54  ;;  %vm2943_vm2 = vcmp.eq.s32.totalorder %v2123_v48, %v2329_v30 }
 0x232   : > { %1482 = vmatpush.xpose.msk.msrb.mxu2 %vm902_vm9, %v1799_v54  ;;  %vm2944_vm9 = vcmp.eq.s32.totalorder %v2114_v47, %v2329_v30 }
 0x235   : > { %1495 = vmatpush.xpose.msk.msrb.mxu3 %vm909_vm12, %v1799_v54  ;;  %1535 = vmatpush.xpose.msk.msrb.mxu1 %vm2942_vm1, %v1799_v54  ;;  %vm2945_vm12 = vcmp.eq.s32.totalorder %v2129_v56, %v2392_v43 }
 0x236   : > { %1483 = vmatpush.xpose.msk.msrb.mxu2 %vm2943_vm2, %v1799_v54 }
 0x239   : > { %1496 = vmatpush.xpose.msk.msrb.mxu3 %vm907_vm11, %v1799_v54  ;;  %1536 = vmatpush.xpose.msk.msrb.mxu1 %vm891_vm6, %v1799_v54  ;;  %vm2946_vm11 = vcmp.eq.s32.totalorder %v2103_v33, %v2329_v30 }
 0x23a   : > { %1484 = vmatpush.xpose.msk.msrb.mxu2 %vm2944_vm9, %v1799_v54 }
 0x23c   : > { %1113 = vmatmul.f32.vlgmr.msrb.gmra.mxu1 %v1625_v58 }
 0x23d   : > { %1497 = vmatpush.xpose.msk.msrb.mxu3 %vm2945_vm12, %v1799_v54 }
 0x23e   : > { %1485 = vmatpush.xpose.msk.msrb.mxu2 %vm2946_vm11, %v1799_v54 }
 0x241   : > { %1498 = vmatpush.xpose.msk.msrb.mxu3 %vm903_vm0, %v1799_v54  ;;  %vm2949_vm0 = vmmov %vm2942_vm1 }
 0x242   : > { %1486 = vmatpush.xpose.msk.msrb.mxu2 %vm2947_vm10, %v1799_v54 }
 0x245   : > { %1499 = vmatpush.xpose.msk.msrb.mxu3 %vm901_vm13, %v1799_v54 }
 0x246   : > { %1487 = vmatpush.xpose.msk.msrb.mxu2 %vm892_vm15, %v1799_v54  ;;  %vm2948_vm15 = vmmov %vm2941_vm8 }
 0x249   : > { %1500 = vmatpush.xpose.msk.msrb.mxu3 %vm899_vm5, %v1799_v54 }
 0x24a   : > { %1488 = vmatpush.xpose.msk.msrb.mxu2 %vm890_vm4, %v1799_v54 }
 0x24d   : > { %1501 = vmatpush.xpose.msk.msrb.mxu3 %vm897_vm7, %v1799_v54  ;;  %1052 = vmatmul.f32.vlgmr.msrb.gmra.mxu2 %v1799_v54 }
 0x251   : > { %1502 = vmatpush.xpose.msk.msrb.mxu3 %vm2948_vm15, %v1799_v54 }
 0x255   : > { %1503 = vmatpush.xpose.msk.msrb.mxu3 %vm2949_vm0, %v1799_v54 }
 0x259   : > { %1504 = vmatpush.xpose.msk.msrb.mxu3 %vm891_vm6, %v1799_v54 }
 0x25c   : > { %1072 = vmatmul.f32.vlgmr.msrb.gmra.mxu3 %v1799_v54 }
 0x25d   : > { %1653 = shalt.err (!%p1650_p5)
}
 0x25e   : > { %1549 = dma.vmem_to_hbm [thread:$0]  (%p1877_p4), %s1165_s12, 32, %s1167_s13, %s1124_s14  }
 0x25f   : > { %s1372_s19 = sshll.u32 %s2380_s16, 4  ;;  %s1547_s20 = sshll.u32 %s1788_s24, 4 }
 0x260   : > { %s282_s28 = scalar_lea.vmem [#allocation2], %s1372_s19  ;;  %s1146_s0 = scalar_lea.hbm %s2895_s3, %s1547_s20 }
 0x261   : > { %s1148_s30 = sshll.u32 %s282_s28, 4  ;;  %s1150_s8 = sshll.u32 %s1146_s0, 4  ;;  %s1149_s30 = int_to_ptr.vmem [resolvable:$true] %s1148_s30  ;;  %s1151_s8 = int_to_ptr.hbm [resolvable:$true] %s1150_s8 }
 0x262   : > { %s1119_s11 = scalar_lea.sflag [#allocation3], %s2380_s16  ;;  %s1668_s15 = sshra.s32 %s1151_s8, 4  ;;  %s1669_s15 = int_to_ptr.hbm [resolvable:$true] %s1668_s15 }
 0x263   : > { %s1670_s12 = scalar_lea.hbm %s1669_s15, 16  ;;  %s1674_s27 = scalar_lea.hbm %s2895_s3, 32 }
 0x264   : > { %p1671_p6 = scmp.ne.s32.totalorder %s1669_s15, %s1670_s12  ;;  %p1675_p10 = scmp.lt.s32.totalorder %s1669_s15, %s2895_s3 }
 0x265   : > { %p1676_p11 = scmp.lt.s32.totalorder %s1674_s27, %s1670_s12 }
 0x266   : > { %p1672_p7 = pnand %p1671_p6, %p1877_p4 }
 0x267   : > { %p1677_p12 = por %p1676_p11, %p1675_p10 }
 0x268   : > { %p1673_p9 = pneg %p1672_p7 }
 0x26a   : > { %p1678_p13 = pnand %p1677_p12, %p1673_p9 }
 0x292   : > { %v1003_v39 = vpop.f32.mrf.mxu2 }
 0x293   : > { %1026 = vst [vmem:[%s282_s28] sm:$0xff] %v1003_v39 }
 0x29f   : > { %v1023_v45 = vpop.f32.mrf.mxu3 }
 0x2a0   : > { %1027 = vst [vmem:[%s282_s28 + $0x8] sm:$0xff] %v1023_v45 }
 0x2a1   : > { %1681 = shalt.err (!%p1678_p13)
}
 0x2a2   : > { %1548 = dma.vmem_to_hbm [thread:$0]  (%p1877_p4), %s1149_s30, 256, %s1151_s8, %s1119_s11  }
 0x2a3   : > { %s1374_s28 = sshll.u32 %s2380_s16, 3  ;;  %s1543_s1 = sshll.u32 %s1788_s24, 3 }
 0x2a4   : > { %s1191_s13 = scalar_lea.hbm %s2898_s6, %s1543_s1  ;;  %s302_s18 = scalar_lea.vmem [#allocation7], %s1374_s28 }
 0x2a5   : > { %s1193_s19 = sshll.u32 %s302_s18, 4  ;;  %s1195_s15 = sshll.u32 %s1191_s13, 4  ;;  %s1194_s19 = int_to_ptr.vmem [resolvable:$true] %s1193_s19  ;;  %s1196_s15 = int_to_ptr.hbm [resolvable:$true] %s1195_s15 }
 0x2a6   : > { %s1133_s12 = scalar_lea.sflag [#allocation8], %s2380_s16  ;;  %s1696_s27 = sshra.s32 %s1196_s15, 4  ;;  %s1697_s27 = int_to_ptr.hbm [resolvable:$true] %s1696_s27 }
 0x2a7   : > { %s1698_s30 = scalar_lea.hbm %s1697_s27, 8  ;;  %s1702_s20 = scalar_lea.hbm %s2898_s6, 16 }
 0x2a8   : > { %p1699_p0 = scmp.ne.s32.totalorder %s1697_s27, %s1698_s30  ;;  %p1703_p3 = scmp.lt.s32.totalorder %s1697_s27, %s2898_s6 }
 0x2a9   : > { %p1704_p5 = scmp.lt.s32.totalorder %s1702_s20, %s1698_s30 }
 0x2aa   : > { %p1700_p1 = pnand %p1699_p0, %p1877_p4 }
 0x2ab   : > { %v1094_v32 = vpop.f32.mrf.mxu0  ;;  %p1705_p6 = por %p1704_p5, %p1703_p3 }
 0x2ac   : > { %p1701_p2 = pneg %p1700_p1 }
 0x2ae   : > { %p1706_p7 = pnand %p1705_p6, %p1701_p2 }
 0x2b9   : > { %v1114_v33 = vpop.f32.mrf.mxu1 }
 0x2ba   : > { %v1115_v47 = vadd.f32 %v1114_v33, %v1094_v32 }
 0x2bc   : > { %1117 = vst [vmem:[%s302_s18] sm:$0xff] %v1115_v47 }
 0x2bd   : > { %1709 = shalt.err (!%p1706_p7)
}
 0x2be   : > { %1551 = dma.vmem_to_hbm [thread:$0]  (%p1877_p4), %s1194_s19, 128, %s1196_s15, %s1133_s12  }
 0x2bf   : > { %s1176_s13 = scalar_lea.hbm %s2897_s5, %s1788_s24  ;;  %s295_s18 = scalar_lea.vmem [#allocation6], %s2380_s16 }
 0x2c0   : > { %s1178_s8 = sshll.u32 %s295_s18, 4  ;;  %s1180_s11 = sshll.u32 %s1176_s13, 4  ;;  %s1179_s8 = int_to_ptr.vmem [resolvable:$true] %s1178_s8  ;;  %s1181_s11 = int_to_ptr.hbm [resolvable:$true] %s1180_s11 }
 0x2c1   : > { %s1724_s27 = sshra.s32 %s1181_s11, 4  ;;  %s1730_s24 = scalar_lea.hbm %s2897_s5, 2  ;;  %s1725_s27 = int_to_ptr.hbm [resolvable:$true] %s1724_s27 }
 0x2c2   : > { %s1726_s30 = scalar_lea.hbm %s1725_s27, 1  ;;  %p1731_p12 = scmp.lt.s32.totalorder %s1725_s27, %s2897_s5 }
 0x2c3   : > { %p1727_p9 = scmp.ne.s32.totalorder %s1725_s27, %s1726_s30  ;;  %p1732_p13 = scmp.lt.s32.totalorder %s1730_s24, %s1726_s30 }
 0x2c5   : > { %p1728_p10 = pnand %p1727_p9, %p1877_p4  ;;  %p1733_p0 = por %p1732_p13, %p1731_p12 }
 0x2c7   : > { %p1729_p11 = pneg %p1728_p10 }
 0x2c9   : > { %p1734_p1 = pnand %p1733_p0, %p1729_p11 }
 0x2d0   : > { %v1053_v48 = vpop.f32.mrf.mxu2 }
 0x2df   : > { %v1073_v55 = vpop.f32.mrf.mxu3 }
 0x2e0   : > { %v1074_v56 = vadd.f32 %v1073_v55, %v1053_v48 }
 0x2e2   : > { %1076 = vst [vmem:[%s295_s18] sm:$0x1] %v1074_v56 }
 0x2e3   : > { %1737 = shalt.err (!%p1734_p1)
}
 0x2e4   : > { %1550 = dma.vmem_to_hbm [thread:$0]  (%p1877_p4), %s1179_s8, 16, %s1181_s11, %s1124_s14  }
 0x2e5 PF: > { %p1569_p2 = scmp.ge.s32.totalorder %s1796_s26, 2  ;;  %s1207_s20 = sand.u32 1, %s1776_s21  }
 0x2e6   : > { %s1208_s28 = scalar_lea.sflag [#allocation3], %s1207_s20 }
 0x2e7   : > { %p1557_p3 = pnand %p1569_p2, %p1886_p8 }
 0x2e9   : > { %p1558_p5 = pneg %p1557_p3 }
 0x2eb   : > { %1763 = dma.done.wait (%p1558_p5), %s1208_s28, 256  }
 0x2ec   : > { %1765 = vsyncadd (%p1558_p5), %s1208_s28, 4294967040  ;;  %s2950_s1 = sadd.s32 4294967294, %s1796_s26  }
 0x2ed   : > { %s1217_s2 = sand.u32 1, %s2950_s1  }
 0x2ee   : > { %s1218_s0 = scalar_lea.sflag [#allocation5], %s1217_s2 }
 0x2ef   : > { %1767 = dma.done.wait (%p1558_p5), %s1218_s0, 48  }
 0x2f0   : > { %1769 = vsyncadd (%p1558_p5), %s1218_s0, 4294967248  ;;  %s1237_s7 = scalar_lea.sflag [#allocation8], %s1207_s20 }
 0x2f1   : > { %1771 = dma.done.wait (%p1558_p5), %s1237_s7, 128  }
 0x2f2   : > { %1773 = vsyncadd (%p1558_p5), %s1237_s7, 4294967168  ;;  %s26_s26 = sadd.s32 1, %s1796_s26   ;;  %s2951_s21 = smov %s1780_s22 }
 0x2f3   : > { %p23_p4 = scmp.ge.s32.totalorder %s26_s26, 4   ;;  %s2952_s22 = smov %s1784_s23 }
 0x2f4   : > { %s2953_s23 = smov %s1892_s10  ;;  %s2954_s24 = smov %s1792_s25 }
 0x2f5   : > { %s2955_s25 = smov %s2957_s29  ;;  %25 = sbr.rel (!%p23_p4) target bundleno = 12 (0xc), region = 116 }
 0x2fa   :  { %1243 = vsyncpa [#allocation3], 1 }
 0x2fb   :  { %1245 = vsyncpa [#allocation3 + $0x1], 1 }
 0x2fc   :  { %1246 = vsyncpa [#allocation5], 1 }
 0x2fd   :  { %1248 = vsyncpa [#allocation5 + $0x1], 1 }
 0x2fe   :  { %1249 = vsyncpa [#allocation8], 1 }
 0x2ff   :  { %1251 = vsyncpa [#allocation8 + $0x1], 1 }

</bundles_post_ra>
